<compile_context>
chip_gen: v5e
topology: v5e:2x2
jax: 0.10.0
libtpu: 0.0.40
codegen_flags: <defaults>
</compile_context>

<pallas_src>
import jax
import jax.numpy as jnp
from jax.experimental import pallas as pl
from jax.experimental.pallas import tpu as pltpu

_LANES = 128


def _make_zero_order_kernel(n_groups: int, n_outputs: int):
    """Kernel for the packed layout.

    Accumulator column layout:
      [ g0 outputs | g1 outputs | ... | g_{P-1} outputs | g0..g_{P-1} rowsums ]
    """

    def kernel(deg_ref, cons_ref, out_ref):
        # Native-dtype operands; f32 accumulation on the MXU.
        acc = jnp.dot(deg_ref[...], cons_ref[...],
                      preferred_element_type=jnp.float32)
        den_base = n_groups * n_outputs
        pieces = []
        for g in range(n_groups):
            num = acc[:, g * n_outputs:(g + 1) * n_outputs]          # (TB, O)
            den = acc[:, den_base + g:den_base + g + 1] + 1e-32      # (TB, 1)
            inv = pl.reciprocal(den, approx=True)                    # EUP slot
            inv = inv * (2.0 - den * inv)                            # Newton step
            pieces.append(num * inv)
        res = pieces[0] if n_groups == 1 else jnp.concatenate(pieces, axis=1)
        out_ref[...] = res.astype(out_ref.dtype)

    return kernel


def _roundup(x: int, m: int) -> int:
    return ((x + m - 1) // m) * m


def _vmem_limit_bytes() -> int:
    """~3/4 of physical VMEM (~48 MiB on v7x, ~96 MiB on v5e/v6e)."""
    try:
        cap = int(pltpu.get_tpu_info().vmem_capacity_bytes)
    except Exception:  # conservative fallback if the query is unavailable
        return 32 << 20
    return min((cap * 3) // 4, 96 << 20)


def _pick_batch_tile(batch: int, in_lanes: int, out_lanes: int,
                     in_itemsize: int, out_itemsize: int,
                     budget_bytes: int = 24 << 20) -> int:
    """Largest batch tile whose *double-buffered* input and output blocks
    (with lane padding to 128) fit the pipeline VMEM budget."""
    per_row = 2 * in_lanes * in_itemsize + 2 * out_lanes * out_itemsize
    tb = budget_bytes // max(1, per_row)
    tb = min(tb, 16384)
    tb = max(8, (tb // 8) * 8)        # sublane-aligned tiles
    if batch <= tb:
        return batch                  # full-dim block is always legal
    return tb


def zero_order_defuzzify(degrees: jax.Array, consequences: jax.Array) -> jax.Array:
    """degrees: (B, n_rules), consequences: (n_rules, n_outputs)."""
    B, R = degrees.shape
    R2, O = consequences.shape
    assert R == R2

    dtype = degrees.dtype
    cons = consequences.astype(dtype)  # single-dtype MXU op (bf16 stays bf16)

    # Lane-packing factor: pack P batch rows across the 128-lane vreg width.
    if R < _LANES and _LANES % R == 0 and B % (_LANES // R) == 0:
        P = _LANES // R
    else:
        P = 1

    Bp, Rp = B // P, P * R
    out_cols = P * O

    # Block-diagonal consequences with fused ones columns:
    #   cols [0, P*O):       kron(I_P, consequences)   -> per-group numerators
    #   cols [P*O, P*O + P): kron(I_P, ones(R, 1))     -> per-group row-sums
    eye = jnp.eye(P, dtype=dtype)
    cons_num = jnp.kron(eye, cons)                                   # (Rp, P*O)
    cons_den = jnp.kron(eye, jnp.ones((R, 1), dtype=dtype))          # (Rp, P)
    cons_packed = jnp.concatenate([cons_num, cons_den], axis=1)      # (Rp, P*(O+1))

    deg_p = degrees.reshape(Bp, Rp)

    itemsize = dtype.itemsize
    in_lanes = _roundup(Rp, _LANES)
    out_lanes = _roundup(out_cols, _LANES)
    TB = _pick_batch_tile(Bp, in_lanes, out_lanes, itemsize, itemsize)
    n_steps = pl.cdiv(Bp, TB)

    deg_spec = pl.BlockSpec((TB, Rp), lambda i: (i, 0))
    # Deepen the degrees pipeline only when tiles are forced small (v5e).
    if n_steps >= 4 and TB * in_lanes * itemsize <= (1 << 20):
        deg_spec = pl.BlockSpec((TB, Rp), lambda i: (i, 0),
                                pipeline_mode=pl.Buffered(3))

    out_p = pl.pallas_call(
        _make_zero_order_kernel(P, O),
        out_shape=jax.ShapeDtypeStruct((Bp, out_cols), dtype),
        grid_spec=pltpu.PrefetchScalarGridSpec(
            num_scalar_prefetch=0,
            grid=(n_steps,),
            in_specs=[
                deg_spec,                                            # pipelined
                pl.BlockSpec((Rp, P * (O + 1)), lambda i: (0, 0)),   # resident
            ],
            out_specs=pl.BlockSpec((TB, out_cols), lambda i: (i, 0)),
        ),
        compiler_params=pltpu.CompilerParams(
            dimension_semantics=("parallel",),   # batch tiles are independent
            vmem_limit_bytes=_vmem_limit_bytes(),
        ),
    )(deg_p, cons_packed)

    # Packed rows are exactly the (B, O) rows laid out contiguously.
    return out_p.reshape(B, O)


if __name__ == "__main__":
    key = jax.random.PRNGKey(0)
    keys = jax.random.split(key, 6)

    def reference(degrees, consequences):
        deg = degrees.astype(jnp.float32)
        cs = consequences.astype(jnp.float32)
        num = (deg[:, :, None] * cs[None, :, :]).sum(axis=1)
        den = deg.sum(axis=1, keepdims=True) + 1e-32
        return num / den

    # ---- 1) small, module-consistent shapes (f32, lane-packed P=4) ----
    B, R, O = 8, 32, 4
    deg = jax.random.uniform(keys[0], (B, R), dtype=jnp.float32)
    cons = jax.random.normal(keys[1], (R, O), dtype=jnp.float32) * jnp.sqrt(2.0 / (R + O))
    out = jax.block_until_ready(zero_order_defuzzify(deg, cons))
    ref = reference(deg, cons)
    assert out.shape == (B, O)
    assert not jnp.isnan(out).any()
    assert jnp.allclose(out, ref, atol=1e-5, rtol=1e-4)

    # ---- 2) larger batch, bf16 degrees (halved HBM read), multi-step grid ----
    B2, R2, O2 = 65536, 64, 8
    deg2 = jax.random.uniform(keys[2], (B2, R2), dtype=jnp.float32).astype(jnp.bfloat16)
    cons2 = (jax.random.normal(keys[3], (R2, O2), dtype=jnp.float32)
             * jnp.sqrt(2.0 / (R2 + O2))).astype(jnp.bfloat16)
    out2 = jax.block_until_ready(zero_order_defuzzify(deg2, cons2))
    ref2 = reference(deg2, cons2)   # same bf16 inputs, f32 math
    assert out2.shape == (B2, O2)
    assert not jnp.isnan(out2.astype(jnp.float32)).any()
    # bf16 output rounding dominates the tolerance here.
    assert jnp.allclose(out2.astype(jnp.float32), ref2, atol=5e-3, rtol=1e-2)

    # ---- 3) fallback path (R does not divide 128 -> no lane packing) ----
    B3, R3, O3 = 100, 200, 5
    deg3 = jax.random.uniform(keys[4], (B3, R3), dtype=jnp.float32)
    cons3 = jax.random.normal(keys[5], (R3, O3), dtype=jnp.float32) * jnp.sqrt(2.0 / (R3 + O3))
    out3 = jax.block_until_ready(zero_order_defuzzify(deg3, cons3))
    ref3 = reference(deg3, cons3)
    assert out3.shape == (B3, O3)
    assert not jnp.isnan(out3).any()
    assert jnp.allclose(out3, ref3, atol=1e-5, rtol=1e-4)

    print("KERNEL_OK")
</pallas_src>

<mosaic_0001>
module attributes {stable_mosaic.version = 11 : i64} {
  func.func @kernel(%arg0: i32, %arg1: memref<2x128xf32, #tpu.memory_space<vmem>>, %arg2: memref<128x20xf32, #tpu.memory_space<vmem>>, %arg3: memref<2x16xf32, #tpu.memory_space<vmem>>) attributes {dimension_semantics = [#tpu.dimension_semantics<parallel>], iteration_bounds = array<i64: 1>, scalar_prefetch = 0 : i64, scratch_operands = 0 : i64, tpu.core_type = #tpu.core_type<tc>, window_params = [{transform_indices = @transform_0, window_bounds = array<i64: 2, 128>}, {pipeline_mode = #tpu.pipeline_mode<synchronous>, transform_indices = @transform_1, window_bounds = array<i64: 128, 20>}, {transform_indices = @transform_2, window_bounds = array<i64: 2, 16>}]} {
    %c0 = arith.constant 0 : index
    %c0_0 = arith.constant 0 : index
    %0 = vector.load %arg1[%c0, %c0_0] : memref<2x128xf32, #tpu.memory_space<vmem>>, vector<2x128xf32>
    %c0_1 = arith.constant 0 : index
    %c0_2 = arith.constant 0 : index
    %1 = vector.load %arg2[%c0_1, %c0_2] : memref<128x20xf32, #tpu.memory_space<vmem>>, vector<128x20xf32>
    %cst = arith.constant dense<0.000000e+00> : vector<2x20xf32>
    %2 = tpu.matmul %0, %1, %cst {dimension_numbers = #tpu.dot_dimension_numbers<[1], [0], [0], [1], [0, 0, 1, 1], [], []>} : vector<2x128xf32>, vector<128x20xf32>, vector<2x20xf32> -> vector<2x20xf32>
    %3 = vector.extract_strided_slice %2 {offsets = [0, 0], sizes = [2, 4], strides = [1, 1]} : vector<2x20xf32> to vector<2x4xf32>
    %4 = vector.extract_strided_slice %2 {offsets = [0, 16], sizes = [2, 1], strides = [1, 1]} : vector<2x20xf32> to vector<2x1xf32>
    %cst_3 = arith.constant 1.000000e-32 : f32
    %5 = vector.broadcast %cst_3 : f32 to vector<2x1xf32>
    %6 = arith.addf %4, %5 : vector<2x1xf32>
    %7 = tpu.reciprocal %6 {approx = true} : vector<2x1xf32> -> vector<2x1xf32>
    %8 = arith.mulf %6, %7 : vector<2x1xf32>
    %cst_4 = arith.constant 2.000000e+00 : f32
    %9 = vector.broadcast %cst_4 : f32 to vector<2x1xf32>
    %10 = arith.subf %9, %8 : vector<2x1xf32>
    %11 = arith.mulf %7, %10 : vector<2x1xf32>
    %12 = vector.broadcast %11 : vector<2x1xf32> to vector<2x4xf32>
    %13 = arith.mulf %3, %12 : vector<2x4xf32>
    %14 = vector.extract_strided_slice %2 {offsets = [0, 4], sizes = [2, 4], strides = [1, 1]} : vector<2x20xf32> to vector<2x4xf32>
    %15 = vector.extract_strided_slice %2 {offsets = [0, 17], sizes = [2, 1], strides = [1, 1]} : vector<2x20xf32> to vector<2x1xf32>
    %cst_5 = arith.constant 1.000000e-32 : f32
    %16 = vector.broadcast %cst_5 : f32 to vector<2x1xf32>
    %17 = arith.addf %15, %16 : vector<2x1xf32>
    %18 = tpu.reciprocal %17 {approx = true} : vector<2x1xf32> -> vector<2x1xf32>
    %19 = arith.mulf %17, %18 : vector<2x1xf32>
    %cst_6 = arith.constant 2.000000e+00 : f32
    %20 = vector.broadcast %cst_6 : f32 to vector<2x1xf32>
    %21 = arith.subf %20, %19 : vector<2x1xf32>
    %22 = arith.mulf %18, %21 : vector<2x1xf32>
    %23 = vector.broadcast %22 : vector<2x1xf32> to vector<2x4xf32>
    %24 = arith.mulf %14, %23 : vector<2x4xf32>
    %25 = vector.extract_strided_slice %2 {offsets = [0, 8], sizes = [2, 4], strides = [1, 1]} : vector<2x20xf32> to vector<2x4xf32>
    %26 = vector.extract_strided_slice %2 {offsets = [0, 18], sizes = [2, 1], strides = [1, 1]} : vector<2x20xf32> to vector<2x1xf32>
    %cst_7 = arith.constant 1.000000e-32 : f32
    %27 = vector.broadcast %cst_7 : f32 to vector<2x1xf32>
    %28 = arith.addf %26, %27 : vector<2x1xf32>
    %29 = tpu.reciprocal %28 {approx = true} : vector<2x1xf32> -> vector<2x1xf32>
    %30 = arith.mulf %28, %29 : vector<2x1xf32>
    %cst_8 = arith.constant 2.000000e+00 : f32
    %31 = vector.broadcast %cst_8 : f32 to vector<2x1xf32>
    %32 = arith.subf %31, %30 : vector<2x1xf32>
    %33 = arith.mulf %29, %32 : vector<2x1xf32>
    %34 = vector.broadcast %33 : vector<2x1xf32> to vector<2x4xf32>
    %35 = arith.mulf %25, %34 : vector<2x4xf32>
    %36 = vector.extract_strided_slice %2 {offsets = [0, 12], sizes = [2, 4], strides = [1, 1]} : vector<2x20xf32> to vector<2x4xf32>
    %37 = vector.extract_strided_slice %2 {offsets = [0, 19], sizes = [2, 1], strides = [1, 1]} : vector<2x20xf32> to vector<2x1xf32>
    %cst_9 = arith.constant 1.000000e-32 : f32
    %38 = vector.broadcast %cst_9 : f32 to vector<2x1xf32>
    %39 = arith.addf %37, %38 : vector<2x1xf32>
    %40 = tpu.reciprocal %39 {approx = true} : vector<2x1xf32> -> vector<2x1xf32>
    %41 = arith.mulf %39, %40 : vector<2x1xf32>
    %cst_10 = arith.constant 2.000000e+00 : f32
    %42 = vector.broadcast %cst_10 : f32 to vector<2x1xf32>
    %43 = arith.subf %42, %41 : vector<2x1xf32>
    %44 = arith.mulf %40, %43 : vector<2x1xf32>
    %45 = vector.broadcast %44 : vector<2x1xf32> to vector<2x4xf32>
    %46 = arith.mulf %36, %45 : vector<2x4xf32>
    %47 = tpu.concatenate %13, %24, %35, %46 in 1 : vector<2x4xf32>, vector<2x4xf32>, vector<2x4xf32>, vector<2x4xf32> -> vector<2x16xf32>
    %c0_11 = arith.constant 0 : index
    %c0_12 = arith.constant 0 : index
    %48 = vector.load %arg3[%c0_11, %c0_12] : memref<2x16xf32, #tpu.memory_space<vmem>>, vector<2x16xf32>
    tpu.vector_store %arg3[%c0_11, %c0_12], %47 {strides = array<i32>} : memref<2x16xf32, #tpu.memory_space<vmem>>, vector<2x16xf32>,
    return
  }
  func.func @transform_0(%arg0: i32) -> (i32, i32) {
    %c0_i32 = arith.constant 0 : i32
    %c0_i32_0 = arith.constant 0 : i32
    return %arg0, %c0_i32 : i32, i32
  }
  func.func @transform_1(%arg0: i32) -> (i32, i32) {
    %c0_i32 = arith.constant 0 : i32
    %c0_i32_0 = arith.constant 0 : i32
    %c0_i32_1 = arith.constant 0 : i32
    return %c0_i32, %c0_i32_0 : i32, i32
  }
  func.func @transform_2(%arg0: i32) -> (i32, i32) {
    %c0_i32 = arith.constant 0 : i32
    %c0_i32_0 = arith.constant 0 : i32
    return %arg0, %c0_i32 : i32, i32
  }
}

</mosaic_0001>

<bundles_post_ra>
// kernel: tpu_custom_call.1
= control target key start
LH: loop header
LB: loop body
LE: loop exit
PB: predicated region body
PF: predicated region fallthrough
CT: control target
= control target key end

     0   :  { %s211_s0 = inlined_call_operand.vmem [shape: f32[2,128], index: 0, kind: input, shape index: {}]   ;;  %s212_s1 = inlined_call_operand.vmem [shape: f32[128,20], index: 1, kind: input, shape index: {}]   ;;  %s213_s2 = inlined_call_operand.hbm [shape: f32[2,16], index: 2, kind: output, shape index: {}]  }
   0x1   :  { %v28_v0 = vld [vmem:[%s212_s1 + $0x78] sm:$0xff]  ;;  %v27_v1 = vld [vmem:[%s212_s1 + $0x70] sm:$0xff]  ;;  %v26_v2 = vld [vmem:[%s212_s1 + $0x68] sm:$0xff] }
   0x2   :  { %29 = vmatpush.msra.mxu0 %v28_v0  ;;  %v25_v3 = vld [vmem:[%s212_s1 + $0x60] sm:$0xff] }
   0x4   :  { %30 = vmatpush.msra.mxu0 %v27_v1 }
   0x6   :  { %31 = vmatpush.msra.mxu0 %v26_v2 }
   0x7   :  { %7 = vsyncpa [#allocation3], 0  ;;  %v24_v4 = vld [vmem:[%s212_s1 + $0x58] sm:$0xff]  ;;  %v23_v5 = vld [vmem:[%s212_s1 + $0x50] sm:$0xff]  ;;  %v137_v17 = vmov 18   ;;  %v138_v18 = vmov 16  }
   0x8   :  { %32 = vmatpush.msra.mxu0 %v25_v3  ;;  %v22_v6 = vld [vmem:[%s212_s1 + $0x48] sm:$0xff]  ;;  %v21_v7 = vld [vmem:[%s212_s1 + $0x40] sm:$0xff]  ;;  %v20_v8 = vld [vmem:[%s212_s1 + $0x38] sm:$0xff]  ;;  %106 = vset.pattern.permute.xlu1 %v137_v17  ;;  %v139_v25 = vmov 19   ;;  %v140_v26 = vmov 17   ;;  %vm75_vm0 = vcmask 31744  }
   0x9   :  { %v19_v9 = vld [vmem:[%s212_s1 + $0x30] sm:$0xff]  ;;  %v18_v10 = vld [vmem:[%s212_s1 + $0x28] sm:$0xff]  ;;  %v17_v11 = vld [vmem:[%s212_s1 + $0x20] sm:$0xff]  ;;  %104 = vset.pattern.permute.xlu0 %v138_v18  ;;  %vm77_vm1 = vcmask 64512   ;;  %s90_s17 = sshll.u32 %s213_s2, 4  ;;  %vm79_vm2 = vcmask 97280   ;;  %s91_s17 = int_to_ptr.hbm [resolvable:$true] %s90_s17 }
   0xa   :  { %33 = vmatpush.msra.mxu0 %v24_v4  ;;  %v16_v12 = vld [vmem:[%s212_s1 + $0x18] sm:$0xff]  ;;  %v15_v13 = vld [vmem:[%s212_s1 + $0x10] sm:$0xff]  ;;  %v14_v14 = vld [vmem:[%s212_s1 + $0x8] sm:$0xff]  ;;  %vm81_vm3 = vcmask 123904  }
   0xb   :  { %v13_v15 = vld [vmem:[%s212_s1] sm:$0xff] }
   0xc   :  { %34 = vmatpush.msra.mxu0 %v23_v5  ;;  %v12_v16 = vld [vmem:[%s211_s0] sm:$0x3]  ;;  %s141_s0 = smov [#allocation2]  }
   0xd   :  { %s88_s1 = sshll.u32 %s141_s0, 4  ;;  %s89_s1 = int_to_ptr.vmem [resolvable:$true] %s88_s1 }
   0xe   :  { %35 = vmatpush.msra.mxu0 %v22_v6 }
  0x10   :  { %36 = vmatpush.msra.mxu0 %v21_v7 }
  0x12   :  { %37 = vmatpush.msra.mxu0 %v20_v8 }
  0x14   :  { %38 = vmatpush.msra.mxu0 %v19_v9 }
  0x16   :  { %39 = vmatpush.msra.mxu0 %v18_v10 }
  0x18   :  { %40 = vmatpush.msra.mxu0 %v17_v11 }
  0x1a   :  { %41 = vmatpush.msra.mxu0 %v16_v12 }
  0x1c   :  { %42 = vmatpush.msra.mxu0 %v15_v13 }
  0x1e   :  { %43 = vmatpush.msra.mxu0 %v14_v14 }
  0x20   :  { %44 = vmatpush.msra.mxu0 %v13_v15 }
  0x21   :  { %45 = vmatmul.f32.vlgmr.msra.gmra.mxu0 %v12_v16 }
  0x9e   :  { %v46_v19 = vpop.f32.mrf.mxu0 }
  0x9f   :  { %v49_v20 = vadd.f32 1e-32, %v46_v19 }
  0xa1   :  { %109 = vrcp.f32 %v49_v20 }
  0xa7   :  { %v110_v21 = vpop.eup %109 }
  0xa8   :  { %v51_v22 = vmul.f32 %v110_v21, %v49_v20 }
  0xaa   :  { %v52_v23 = vsub.f32 2.0, %v51_v22 }
  0xac   :  { %v53_v24 = vmul.f32 %v110_v21, %v52_v23 }
  0xae   :  { %66 = vperm.xlu1 %106, %v53_v24   ;;  %56 = vperm.xlu0 %104, %v53_v24  }
  0xb6   :  { %107 = vset.pattern.permute.xlu1 %v139_v25  ;;  %105 = vset.pattern.permute.xlu0 %v140_v26 }
  0xb7   :  { %71 = vperm.xlu1 %107, %v53_v24   ;;  %61 = vperm.xlu0 %105, %v53_v24  }
  0xbf   :  { %108 = vset.pattern.permute.xlu0 %v139_v25 }
 0x120   :  { %v67_v27 = vpop.permute.xlu1 %66  ;;  %v57_v28 = vpop.permute.xlu0 %56 }
 0x121   :  { %v59_v31 = vmul.f32 %v57_v28, %v46_v19  ;;  %v69_v33 = vmul.f32 %v67_v27, %v46_v19 }
 0x129   :  { %v72_v29 = vpop.permute.xlu1 %71  ;;  %v62_v30 = vpop.permute.xlu0 %61 }
 0x12a   :  { %v64_v32 = vmul.f32 %v62_v30, %v46_v19  ;;  %v74_v34 = vmul.f32 %v72_v29, %v46_v19 }
 0x12c   :  { %v76_v35 = vsel %vm75_vm0, %v59_v31, %v64_v32 }
 0x12d   :  { %v78_v36 = vsel %vm77_vm1, %v76_v35, %v69_v33 }
 0x12e   :  { %v80_v37 = vsel %vm79_vm2, %v78_v36, %v74_v34 }
 0x12f   :  { %82 = vst.msk [vmem:[#allocation2] sm:$0x3] %vm81_vm3, %v80_v37 }
 0x130   :  { %93 = dma.vmem_to_hbm [thread:$0]  %s89_s1, 32, %s91_s17, [#allocation3]  }
 0x131   :  { %135 = dma.done.wait [#allocation3], 32  }
 0x132   :  { %136 = vsyncadd [#allocation3], 4294967264 }
 0x133   :  { %98 = vsyncpa [#allocation3], 1 }

</bundles_post_ra>
